<compile_context>
chip_gen: v6e
topology: v6e:2x2x1
jax: 0.10.0
libtpu: 0.0.40
codegen_flags: <defaults>
</compile_context>

<pallas_src>
import functools

import jax
import jax.numpy as jnp
import numpy as np
from jax import lax
from jax.experimental import pallas as pl
from jax.experimental.pallas import tpu as pltpu

KSIZE = 3  # Conv1d kernel_size


def _temporal_gated_conv_kernel(x_ref, w_ref, b_ref, o_ref, *, cout, dilation):
    """One tile of Bt batch elements per grid step.

    x_ref : (Bt, Cin, L)           NCL input tile (PyTorch layout, no wrapper pad)
    w_ref : (3*Cout, KSIZE*Cin)    fused weights for conv_1 / conv_2 / conv_3
    b_ref : (3*Cout, 1)            fused biases
    o_ref : (Bt, Cout, L)          output tile, NCL
    """
    bt, cin, length = x_ref.shape
    x = x_ref[...]

    # 'same' padding (k=3 -> `dilation` zeros each side), done in VMEM.
    zpad = jnp.zeros((bt, cin, dilation), dtype=x.dtype)
    xp = jnp.concatenate([zpad, x, zpad], axis=-1)              # (Bt, Cin, L + 2d)

    # im2col over the 3 taps, tap-major to match the fused weight layout.
    taps = [xp[:, :, k * dilation:k * dilation + length] for k in range(KSIZE)]
    xcat = jnp.concatenate(taps, axis=1)                        # (Bt, K*Cin, L)

    w = w_ref[...]                                              # (3Cout, K*Cin)
    bias = b_ref[...]                                           # (3Cout, 1)

    # Single fused, batched MXU contraction for all three convolutions at once.
    wb = jnp.broadcast_to(w[None], (bt,) + w.shape)             # (Bt, 3Cout, K*Cin)
    acc = jnp.einsum("bok,bkl->bol", wb, xcat,
                     preferred_element_type=jnp.float32)        # (Bt, 3Cout, L)
    acc = acc + bias[None]                                      # bias once, post-matmul

    p = acc[:, 0 * cout:1 * cout, :]
    q = acc[:, 1 * cout:2 * cout, :]
    r = acc[:, 2 * cout:3 * cout, :]
    h = jnp.maximum(p * jax.nn.sigmoid(q) + r, 0.0)             # relu(P*sig(Q)+R)
    o_ref[...] = h.astype(o_ref.dtype)                          # one full-block store


def temporal_gated_conv(x_ncl, w1, b1, w2, b2, w3, b3, *, dilation=1, batch_tile=8):
    """x_ncl: (B, Cin, L) float32; w*: (Cout, Cin, 3) (PyTorch layout); b*: (Cout,)."""
    B, Cin, L = x_ncl.shape
    Cout = w1.shape[0]

    # Fuse the three convs: stack along Cout, flatten taps into the K*Cin dim so
    # w_big[o, k*Cin + ci] == w[o, ci, k]  (matches the im2col tap ordering).
    w_fused = jnp.concatenate([w1, w2, w3], axis=0)             # (3Cout, Cin, K)
    w_big = jnp.transpose(w_fused, (0, 2, 1)).reshape(3 * Cout, KSIZE * Cin)
    b_big = jnp.concatenate([b1, b2, b3], axis=0).reshape(3 * Cout, 1)

    # Pick a batch tile that divides B exactly (several batch elems per grid step).
    bt = max(1, min(B, batch_tile))
    while B % bt:
        bt -= 1

    kernel = functools.partial(_temporal_gated_conv_kernel,
                               cout=Cout, dilation=dilation)

    return pl.pallas_call(
        kernel,
        out_shape=jax.ShapeDtypeStruct((B, Cout, L), x_ncl.dtype),
        grid_spec=pltpu.PrefetchScalarGridSpec(
            num_scalar_prefetch=0,
            grid=(B // bt,),
            in_specs=[
                pl.BlockSpec((bt, Cin, L), lambda i: (i, 0, 0)),
                pl.BlockSpec((3 * Cout, KSIZE * Cin), lambda i: (0, 0)),
                pl.BlockSpec((3 * Cout, 1), lambda i: (0, 0)),
            ],
            out_specs=pl.BlockSpec((bt, Cout, L), lambda i: (i, 0, 0)),
        ),
        compiler_params=pltpu.CompilerParams(
            dimension_semantics=("parallel",)),
    )(x_ncl, w_big, b_big)


def _reference(x_ncl, w1, b1, w2, b2, w3, b3, *, dilation=1):
    """Pure-JAX reference (lax conv) matching PyTorch Conv1d padding='same'."""
    dn = lax.conv_dimension_numbers(x_ncl.shape, w1.shape, ("NCH", "OIH", "NCH"))
    pad = dilation * (KSIZE - 1) // 2

    def conv(w, b):
        y = lax.conv_general_dilated(
            x_ncl, w, window_strides=(1,), padding=[(pad, pad)],
            rhs_dilation=(dilation,), dimension_numbers=dn)
        return y + b.reshape(1, -1, 1)

    p = conv(w1, b1)
    q = jax.nn.sigmoid(conv(w2, b2))
    r = conv(w3, b3)
    return jnp.maximum(p * q + r, 0.0)


if __name__ == "__main__":
    # X shape per the module: (batch_size * num_nodes, in_channels, time_steps)
    B, Cin, Cout, L = 8, 4, 4, 16

    key = jax.random.PRNGKey(0)
    kx, k1, k2, k3, k4, k5, k6 = jax.random.split(key, 7)

    x = jax.random.normal(kx, (B, Cin, L), dtype=jnp.float32)
    # PyTorch Conv1d default init bounds; shapes (Cout, Cin, K) / (Cout,).
    bound = 1.0 / np.sqrt(Cin * KSIZE)
    w1 = jax.random.uniform(k1, (Cout, Cin, KSIZE), jnp.float32, -bound, bound)
    b1 = jax.random.uniform(k2, (Cout,), jnp.float32, -bound, bound)
    w2 = jax.random.uniform(k3, (Cout, Cin, KSIZE), jnp.float32, -bound, bound)
    b2 = jax.random.uniform(k4, (Cout,), jnp.float32, -bound, bound)
    w3 = jax.random.uniform(k5, (Cout, Cin, KSIZE), jnp.float32, -bound, bound)
    b3 = jax.random.uniform(k6, (Cout,), jnp.float32, -bound, bound)

    out = temporal_gated_conv(x, w1, b1, w2, b2, w3, b3, batch_tile=4)
    out = jax.block_until_ready(out)

    ref = jax.block_until_ready(_reference(x, w1, b1, w2, b2, w3, b3))
    np.testing.assert_allclose(np.asarray(out), np.asarray(ref),
                               rtol=1e-5, atol=1e-5)

    print("KERNEL_OK")
</pallas_src>

<mosaic_0001>
module attributes {stable_mosaic.version = 11 : i64} {
  func.func @_temporal_gated_conv_kernel(%arg0: i32, %arg1: memref<4x4x16xf32, #tpu.memory_space<vmem>>, %arg2: memref<12x12xf32, #tpu.memory_space<vmem>>, %arg3: memref<12x1xf32, #tpu.memory_space<vmem>>, %arg4: memref<4x4x16xf32, #tpu.memory_space<vmem>>) attributes {dimension_semantics = [#tpu.dimension_semantics<parallel>], iteration_bounds = array<i64: 2>, scalar_prefetch = 0 : i64, scratch_operands = 0 : i64, tpu.core_type = #tpu.core_type<tc>, window_params = [{transform_indices = @transform_0, window_bounds = array<i64: 4, 4, 16>}, {pipeline_mode = #tpu.pipeline_mode<synchronous>, transform_indices = @transform_1, window_bounds = array<i64: 12, 12>}, {pipeline_mode = #tpu.pipeline_mode<synchronous>, transform_indices = @transform_2, window_bounds = array<i64: 12, 1>}, {transform_indices = @transform_3, window_bounds = array<i64: 4, 4, 16>}]} {
    %c0 = arith.constant 0 : index
    %c0_0 = arith.constant 0 : index
    %c0_1 = arith.constant 0 : index
    %0 = vector.load %arg1[%c0, %c0_0, %c0_1] : memref<4x4x16xf32, #tpu.memory_space<vmem>>, vector<4x4x16xf32>
    %cst = arith.constant 0.000000e+00 : f32
    %1 = vector.broadcast %cst : f32 to vector<4x4x1xf32>
    %2 = tpu.concatenate %1, %0, %1 in 2 : vector<4x4x1xf32>, vector<4x4x16xf32>, vector<4x4x1xf32> -> vector<4x4x18xf32>
    %3 = vector.extract_strided_slice %2 {offsets = [0, 0, 0], sizes = [4, 4, 16], strides = [1, 1, 1]} : vector<4x4x18xf32> to vector<4x4x16xf32>
    %4 = vector.extract_strided_slice %2 {offsets = [0, 0, 1], sizes = [4, 4, 16], strides = [1, 1, 1]} : vector<4x4x18xf32> to vector<4x4x16xf32>
    %5 = vector.extract_strided_slice %2 {offsets = [0, 0, 2], sizes = [4, 4, 16], strides = [1, 1, 1]} : vector<4x4x18xf32> to vector<4x4x16xf32>
    %6 = tpu.concatenate %3, %4, %5 in 1 : vector<4x4x16xf32>, vector<4x4x16xf32>, vector<4x4x16xf32> -> vector<4x12x16xf32>
    %c0_2 = arith.constant 0 : index
    %c0_3 = arith.constant 0 : index
    %7 = vector.load %arg2[%c0_2, %c0_3] : memref<12x12xf32, #tpu.memory_space<vmem>>, vector<12x12xf32>
    %c0_4 = arith.constant 0 : index
    %c0_5 = arith.constant 0 : index
    %8 = vector.load %arg3[%c0_4, %c0_5] : memref<12x1xf32, #tpu.memory_space<vmem>>, vector<12x1xf32>
    %9 = vector.shape_cast %7 : vector<12x12xf32> to vector<1x12x12xf32>
    %10 = vector.shape_cast %9 : vector<1x12x12xf32> to vector<1x12x12xf32>
    %11 = vector.broadcast %10 : vector<1x12x12xf32> to vector<4x12x12xf32>
    "tpu.trace_start"() <{level = 10 : i32, message = "bok,bkl->bol"}> : () -> ()
    %cst_6 = arith.constant dense<0.000000e+00> : vector<4x12x16xf32>
    %12 = tpu.matmul %11, %6, %cst_6 {dimension_numbers = #tpu.dot_dimension_numbers<[2], [1], [1], [2], [0, 0, 0, 1, 1, 2], [0], [0]>} : vector<4x12x12xf32>, vector<4x12x16xf32>, vector<4x12x16xf32> -> vector<4x12x16xf32>
    "tpu.trace_stop"() : () -> ()
    %13 = vector.shape_cast %8 : vector<12x1xf32> to vector<1x12x1xf32>
    %14 = vector.broadcast %13 : vector<1x12x1xf32> to vector<4x12x16xf32>
    %15 = arith.addf %12, %14 : vector<4x12x16xf32>
    %16 = vector.extract_strided_slice %15 {offsets = [0, 0, 0], sizes = [4, 4, 16], strides = [1, 1, 1]} : vector<4x12x16xf32> to vector<4x4x16xf32>
    %17 = vector.extract_strided_slice %15 {offsets = [0, 4, 0], sizes = [4, 4, 16], strides = [1, 1, 1]} : vector<4x12x16xf32> to vector<4x4x16xf32>
    %18 = vector.extract_strided_slice %15 {offsets = [0, 8, 0], sizes = [4, 4, 16], strides = [1, 1, 1]} : vector<4x12x16xf32> to vector<4x4x16xf32>
    %19 = arith.negf %17 : vector<4x4x16xf32>
    %20 = math.exp %19 : vector<4x4x16xf32>
    %cst_7 = arith.constant 1.000000e+00 : f32
    %21 = vector.broadcast %cst_7 : f32 to vector<4x4x16xf32>
    %22 = arith.addf %21, %20 : vector<4x4x16xf32>
    %23 = arith.divf %21, %22 : vector<4x4x16xf32>
    %24 = arith.mulf %16, %23 : vector<4x4x16xf32>
    %25 = arith.addf %24, %18 : vector<4x4x16xf32>
    %cst_8 = arith.constant 0.000000e+00 : f32
    %26 = vector.broadcast %cst_8 : f32 to vector<4x4x16xf32>
    %27 = arith.maximumf %25, %26 : vector<4x4x16xf32>
    %c0_9 = arith.constant 0 : index
    %c0_10 = arith.constant 0 : index
    %c0_11 = arith.constant 0 : index
    %28 = vector.load %arg4[%c0_9, %c0_10, %c0_11] : memref<4x4x16xf32, #tpu.memory_space<vmem>>, vector<4x4x16xf32>
    tpu.vector_store %arg4[%c0_9, %c0_10, %c0_11], %27 {strides = array<i32>} : memref<4x4x16xf32, #tpu.memory_space<vmem>>, vector<4x4x16xf32>,
    return
  }
  func.func @transform_0(%arg0: i32) -> (i32, i32, i32) {
    %c0_i32 = arith.constant 0 : i32
    %c0_i32_0 = arith.constant 0 : i32
    %c0_i32_1 = arith.constant 0 : i32
    return %arg0, %c0_i32, %c0_i32_0 : i32, i32, i32
  }
  func.func @transform_1(%arg0: i32) -> (i32, i32) {
    %c0_i32 = arith.constant 0 : i32
    %c0_i32_0 = arith.constant 0 : i32
    %c0_i32_1 = arith.constant 0 : i32
    return %c0_i32, %c0_i32_0 : i32, i32
  }
  func.func @transform_2(%arg0: i32) -> (i32, i32) {
    %c0_i32 = arith.constant 0 : i32
    %c0_i32_0 = arith.constant 0 : i32
    %c0_i32_1 = arith.constant 0 : i32
    return %c0_i32, %c0_i32_0 : i32, i32
  }
  func.func @transform_3(%arg0: i32) -> (i32, i32, i32) {
    %c0_i32 = arith.constant 0 : i32
    %c0_i32_0 = arith.constant 0 : i32
    %c0_i32_1 = arith.constant 0 : i32
    return %arg0, %c0_i32, %c0_i32_0 : i32, i32, i32
  }
}

</mosaic_0001>

<bundles_post_ra>
// kernel: tpu_custom_call.1
= control target key start
LH: loop header
LB: loop body
LE: loop exit
PB: predicated region body
PF: predicated region fallthrough
CT: control target
= control target key end

     0   :  { %8 = vsyncpa [#allocation3], 0  ;;  %s1203_s0 = inlined_call_operand.hbm [shape: f32[8,4,16], index: 0, kind: input, shape index: {}]   ;;  %s1204_s1 = inlined_call_operand.vmem [shape: f32[12,12], index: 1, kind: input, shape index: {}]   ;;  %s1205_s2 = inlined_call_operand.vmem [shape: f32[12,1], index: 2, kind: input, shape index: {}]   ;;  %s1206_s3 = inlined_call_operand.hbm [shape: f32[8,4,16], index: 3, kind: output, shape index: {}]  }
   0x1   :  { %10 = vsyncpa [#allocation3 + $0x1], 0 }
   0x2   :  { %11 = vsyncpa [#allocation4], 0 }
   0x3   :  { %13 = vsyncpa [#allocation4 + $0x1], 0  ;;  %s995_s12 = smov 0   ;;  %s997_s13 = smov 0  }
   0x4   :  { %s999_s14 = smov 0   ;;  %s1001_s15 = smov 0  }
   0x5 LB: > { %s1016_s16 = sadd.s32 4294967295, %s963_s15   ;;  %s723_s17 = sadd.s32 4294967294, %s963_s15   ;;  %s963_s15 = sphi %s1001_s15, %s1221_s15   ;;  %s959_s14 = sphi %s999_s14, %s1220_s14   ;;  %s955_s13 = sphi %s997_s13, %s1219_s13   ;;  %s951_s12 = sphi %s995_s12, %s1218_s12  }
   0x6   : > { %s1020_s18 = sadd.s32 1, %s963_s15   ;;  %s26_s19 = sadd.s32 1, %s959_s14 }
   0x7   : > { %s23_s20 = ssub.s32 %s963_s15, %s1020_s18  ;;  %p33_p0 = scmp.ne.s32.totalorder %s959_s14, %s955_s13 }
   0x8   : > { %p24_p1 = scmp.eq.s32.totalorder %s23_s20, 0  ;;  %p34_p2 = scmp.eq.s32.totalorder %s963_s15, 0 }
   0x9   : > { %p39_p3 = scmp.ne.s32.totalorder %s955_s13, %s951_s12  ;;  %p40_p4 = scmp.eq.s32.totalorder %s1016_s16, 0 }
   0xa   : > { %s1032_s21 = scalar_select %p24_p1, %s959_s14, %s26_s19  }
   0xb   : > { %p1034_p5 = por %p34_p2, %p33_p0  ;;  %p1038_p6 = por %p40_p4, %p39_p3 }
   0xc   : > { %p105_p7 = scmp.eq.s32.totalorder %s1016_s16, 1  ;;  %p111_p8 = scmp.eq.s32.totalorder %s723_s17, 1 }
   0xd   : > { %s1210_s23 = scalar_select %p1038_p6, 1, 0 }
   0xe   : > { %p811_p10 = scmp.lt.s32.totalorder %s963_s15, 2  ;;  %p1045_p11 = por %p105_p7, %p33_p0 }
   0xf   : > { %p1049_p12 = por %p111_p8, %p39_p3  ;;  %s137_s26 = sand.u32 1, %s959_s14  }
  0x10   : > { %s1211_s24 = scalar_select %p1045_p11, 1, 0 }
  0x11   : > { %s1212_s25 = scalar_select %p1049_p12, 1, 0 }
  0x12   : > { %s753_s27 = sshll.u32 %s963_s15, 8  ;;  %s726_s28 = sshll.u32 %s137_s26, 4 }
  0x13   : > { %s1058_s4 = scalar_lea.hbm %s1203_s0, %s753_s27  ;;  %s141_s5 = scalar_lea.vmem [#allocation2], %s726_s28 }
  0x14   : > { %s148_s6 = sshll.u32 %s141_s5, 4  ;;  %p1062_p13 = pnand %p811_p10, %p1034_p5  ;;  %s1066_s6 = int_to_ptr.vmem [resolvable:$true] %s148_s6 }
  0x15   : > { %s1068_s8 = scalar_lea.sflag [#allocation3], %s137_s26  ;;  %s871_s9 = scalar_lea.hbm %s1058_s4, 256 }
  0x16   : > { %p872_p0 = scmp.ne.s32.totalorder %s1058_s4, %s871_s9  ;;  %p873_p1 = pneg %p1062_p13 }
  0x17   : > { %s876_s17 = scalar_lea.hbm %s1203_s0, 512  ;;  %p877_p4 = scmp.lt.s32.totalorder %s1058_s4, %s1203_s0 }
  0x18   : > { %p874_p2 = pnand %p873_p1, %p872_p0  ;;  %p878_p5 = scmp.lt.s32.totalorder %s876_s17, %s871_s9 }
  0x1a   : > { %p875_p3 = pneg %p874_p2  ;;  %p879_p7 = por %p878_p5, %p877_p4 }
  0x1c   : > { %p880_p8 = pnand %p879_p7, %p875_p3 }
  0x1e   : > { %883 = shalt.err (!%p880_p8)
}
  0x1f   : > { %s884_s22 = scalar_lea.vmem %s1066_s6, 256  ;;  %s965_s26 = smov [#allocation2]  }
  0x20   : > { %p885_p10 = scmp.ne.s32.totalorder %s1066_s6, %s884_s22  ;;  %s889_s27 = sshll.u32 %s965_s26, 4  ;;  %s890_s27 = int_to_ptr.vmem [resolvable:$false] %s889_s27 }
  0x21   : > { %s891_s28 = scalar_lea.vmem %s890_s27, 512  ;;  %p892_p2 = scmp.lt.s32.totalorder %s1066_s6, %s890_s27 }
  0x22   : > { %p887_p9 = pnand %p885_p10, %p873_p1  ;;  %p893_p12 = scmp.lt.s32.totalorder %s891_s28, %s884_s22 }
  0x24   : > { %p888_p0 = pneg %p887_p9  ;;  %p894_p11 = por %p893_p12, %p892_p2 }
  0x26   : > { %p895_p6 = pnand %p894_p11, %p888_p0 }
  0x28   : > { %898 = shalt.err (!%p895_p6)
}
  0x29   : > { %s966_s29 = smov 64   ;;  %s967_s30 = smov 4  }
  0x2a   : > { %806 = dma.hbm_to_vmem [thread:$0]  (!%p1062_p13), %s1058_s4, 256, %s1066_s6, %s1068_s8, %s966_s29, %s966_s29, %s967_s30  }
  0x2b   : > { %p729_p9 = scmp.ge.s32.totalorder %s963_s15, 1  ;;  %p156_p1 = scmp.lt.s32.totalorder %s963_s15, 3 }
  0x2d   : > { %p157_p3 = pnand %p729_p9, %p156_p1 }
  0x2e   : > { %s1092_s5 = sand.u32 (!%p157_p3), 1, %s955_s13   ;;  %p1214_p6 = scmp.ne.s32.totalorder (!%p157_p3), %s1210_s23, 0 }
  0x2f   : > { %160 = sbr.rel (%p157_p3) target bundleno = 556 (0x22c), region = 32  ;;  %s730_s9 = sshll.u32 (!%p157_p3), %s1092_s5, 4 }
  0x30   : > { %s163_s10 = scalar_lea.sflag (!%p157_p3), [#allocation3], %s1092_s5  ;;  %s166_s11 = scalar_lea.vmem (!%p157_p3), [#allocation2], %s730_s9 }
  0x34   : > { %942 = dma.done.wait (%p1214_p6), %s163_s10, 256  }
  0x35   : > { %944 = vsyncadd (%p1214_p6), %s163_s10, 4294967040  ;;  %v191_v0 = vld [vmem:[%s166_s11] sm:$0xf]  ;;  %v193_v1 = vld [vmem:[%s166_s11 + $0x8] sm:$0xf]  ;;  %s968_s4 = smov 1  }
  0x36   : > { %199 = vrot.lane.b32.xlu0 %v191_v0, %s968_s4  ;;  %203 = vrot.lane.b32.xlu1 %v193_v1, %s968_s4  ;;  %v192_v2 = vld [vmem:[%s166_s11 + $0x4] sm:$0xf]  ;;  %v194_v3 = vld [vmem:[%s166_s11 + $0xc] sm:$0xf]  ;;  %vm211_vm0 = vcmask 7168   ;;  %vm216_vm1 = vcmask 138240  }
  0x37   : > { %v1105_v4 = vld [vmem:[%s1204_s1] sm:$0xff]  ;;  %vm268_vm2 = vcmask 97280   ;;  %s969_s23 = smov 126   ;;  %v970_v18 = vmov 0   ;;  %s971_s8 = smov 127   ;;  %vm249_vm3 = vcmask 1043456  }
  0x38   : > { %775 = vmatprep.mubr.msk.f32.mxu0 %vm268_vm2, %v1105_v4  ;;  %782 = vmatprep.mubr.msk.f32.mxu1 %vm268_vm2, %v1105_v4  ;;  %v256_v21 = vld [vmem:[%s1205_s2] sm:$0xff]  ;;  %v257_v23 = vld [vmem:[%s1205_s2 + $0x8] sm:$0xf]  ;;  %vm631_vm4 = vcmask 125952   ;;  %s188_s28 = scalar_lea.vmem [#allocation5], %s730_s9  ;;  %s754_s29 = sshll.u32 %s1016_s16, 8 }
  0x39   : > { %853 = vset.pattern.permute.xlu0 %v970_v18  ;;  %854 = vset.pattern.permute.xlu1 %v970_v18  ;;  %v255_v30 = vld [vmem:[%s1204_s1 + $0x8] sm:$0xf]  ;;  %s650_s30 = sshll.u32 %s188_s28, 4  ;;  %s1157_s11 = scalar_lea.hbm %s1206_s3, %s754_s29  ;;  %s1159_s30 = int_to_ptr.vmem [resolvable:$true] %s650_s30 }
  0x3a   : > { %201 = vrot.lane.b32.xlu0 %v192_v2, %s968_s4  ;;  %205 = vrot.lane.b32.xlu1 %v194_v3, %s968_s4  ;;  %s637_s16 = scalar_lea.sflag [#allocation4], %s1092_s5  ;;  %s899_s4 = scalar_lea.vmem %s1159_s30, 256 }
  0x3b   : > { %p900_p11 = scmp.ne.s32.totalorder %s1159_s30, %s899_s4  ;;  %p1215_p12 = scmp.ne.s32.totalorder %s1211_s24, 0 }
  0x3c   : > { %s972_s6 = smov [#allocation5]  }
  0x3d   : > { %p901_p13 = pnand %p900_p11, %p1215_p12  ;;  %s903_s7 = sshll.u32 %s972_s6, 4  ;;  %s904_s7 = int_to_ptr.vmem [resolvable:$false] %s903_s7 }
  0x3e   : > { %p906_p5 = scmp.lt.s32.totalorder %s1159_s30, %s904_s7 }
  0x3f   : > { %p902_p4 = pneg %p901_p13 }
  0xa8   : > { %v200_v5 = vpop.permute.xlu0 %199  ;;  %v204_v6 = vpop.permute.xlu1 %203 }
  0xa9   : > { %v212_v7 = vsel %vm211_vm0, 0.0, %v200_v5  ;;  %v214_v8 = vsel %vm211_vm0, 0.0, %v204_v6 }
  0xaa   : > { %v217_v9 = vsel %vm216_vm1, %v212_v7, 0.0  ;;  %v219_v10 = vsel %vm216_vm1, %v214_v8, 0.0 }
  0xab   : > { %241 = vrot.lane.b32.xlu0 %v217_v9, %s969_s23  ;;  %v225_v17 = vrot.slane %v217_v9, 4  ;;  %v227_v19 = vrot.slane %v219_v10, 4 }
  0xac   : > { %v202_v11 = vpop.permute.xlu0 %201  ;;  %v206_v12 = vpop.permute.xlu1 %205 }
  0xad   : > { %v213_v13 = vsel %vm211_vm0, 0.0, %v202_v11  ;;  %v215_v14 = vsel %vm211_vm0, 0.0, %v206_v12 }
  0xae   : > { %v218_v15 = vsel %vm216_vm1, %v213_v13, 0.0  ;;  %v220_v16 = vsel %vm216_vm1, %v215_v14, 0.0 }
  0xaf   : > { %245 = vrot.lane.b32.xlu0 %v219_v10, %s969_s23  ;;  %243 = vrot.lane.b32.xlu1 %v218_v15, %s969_s23  ;;  %v226_v20 = vrot.slane %v218_v15, 4  ;;  %v228_v22 = vrot.slane %v220_v16, 4 }
  0xb3   : > { %229 = vrot.lane.b32.xlu0 %v225_v17, %s971_s8  ;;  %247 = vrot.lane.b32.xlu1 %v220_v16, %s969_s23  ;;  %s905_s23 = scalar_lea.vmem %s904_s7, 512 }
  0xb4   : > { %p907_p7 = scmp.lt.s32.totalorder %s905_s23, %s899_s4 }
  0xb6   : > { %p908_p8 = por %p907_p7, %p906_p5 }
  0xb7   : > { %233 = vrot.lane.b32.xlu0 %v227_v19, %s971_s8  ;;  %231 = vrot.lane.b32.xlu1 %v226_v20, %s971_s8 }
  0xb8   : > { %p909_p10 = pnand %p908_p8, %p902_p4 }
  0xbb   : > { %235 = vrot.lane.b32.xlu1 %v228_v22, %s971_s8  ;;  %260 = vperm.xlu0 %853, %v256_v21  }
  0xbf   : > { %265 = vperm.xlu1 %854, %v257_v23  }
 0x11d   : > { %v242_v24 = vpop.permute.xlu0 %241 }
 0x11e   : > { %771 = vmatprep.subr.msk.mxu0 %vm249_vm3, %v242_v24 }
 0x11f   : > { %772 = vmatpush3.msk.msra.mxu0 %vm249_vm3, %v242_v24 }
 0x121   : > { %v244_v25 = vpop.permute.xlu1 %243  ;;  %v246_v26 = vpop.permute.xlu0 %245 }
 0x122   : > { %778 = vmatprep.subr.msk.mxu1 %vm249_vm3, %v244_v25 }
 0x123   : > { %779 = vmatpush3.msk.msra.mxu1 %vm249_vm3, %v244_v25 }
 0x125   : > { %v248_v27 = vpop.permute.xlu1 %247  ;;  %v230_v28 = vpop.permute.xlu0 %229 }
 0x126   : > { %v250_v29 = vsel %vm249_vm3, %v217_v9, %v230_v28 }
 0x127   : > { %773 = vmatprep.subr.mxu0 %v250_v29 }
 0x128   : > { %774 = vmatpush3.msra.mxu0 %v250_v29 }
 0x129   : > { %v232_v31 = vpop.permute.xlu1 %231  ;;  %776 = vmatmul.mubr.msk.f32.vlgmr.msra.gmra.mxu0 %vm268_vm2, %v255_v30  ;;  %785 = vmatprep.subr.msk.mxu0 %vm249_vm3, %v246_v26  ;;  %v234_v32 = vpop.permute.xlu0 %233 }
 0x12a   : > { %786 = vmatpush3.msk.msra.mxu0 %vm249_vm3, %v246_v26  ;;  %v251_v33 = vsel %vm249_vm3, %v218_v15, %v232_v31  ;;  %v252_v34 = vsel %vm249_vm3, %v219_v10, %v234_v32  ;;  %789 = vmatprep.mubr.msk.f32.mxu0 %vm268_vm2, %v1105_v4 }
 0x12b   : > { %780 = vmatprep.subr.mxu1 %v251_v33  ;;  %787 = vmatprep.subr.mxu0 %v252_v34 }
 0x12c   : > { %781 = vmatpush3.msra.mxu1 %v251_v33  ;;  %788 = vmatpush3.msra.mxu0 %v252_v34 }
 0x12d   : > { %783 = vmatmul.mubr.msk.f32.vlgmr.msra.gmra.mxu1 %vm268_vm2, %v255_v30  ;;  %792 = vmatprep.subr.msk.mxu1 %vm249_vm3, %v248_v27  ;;  %v236_v35 = vpop.permute.xlu1 %235 }
 0x12e   : > { %790 = vmatmul.mubr.msk.f32.vlgmr.msra.gmra.mxu0 %vm268_vm2, %v255_v30  ;;  %793 = vmatpush3.msk.msra.mxu1 %vm249_vm3, %v248_v27  ;;  %v253_v36 = vsel %vm249_vm3, %v220_v16, %v236_v35 }
 0x12f   : > { %794 = vmatprep.subr.mxu1 %v253_v36  ;;  %796 = vmatprep.mubr.msk.f32.mxu1 %vm268_vm2, %v1105_v4 }
 0x130   : > { %795 = vmatpush3.msra.mxu1 %v253_v36 }
 0x131   : > { %797 = vmatmul.mubr.msk.f32.vlgmr.msra.gmra.mxu1 %vm268_vm2, %v255_v30 }
 0x136   : > { %v261_v38 = vpop.permute.xlu0 %260 }
 0x13a   : > { %v266_v63 = vpop.permute.xlu1 %265 }
 0x1e9   : > { %v777_v37 = vpop.f32.mrf.mxu0 }
 0x1ea   : > { %v349_v2 = vadd.f32 %v777_v37, %v266_v63 }
 0x1eb   : > { %v343_v39 = vpop.f32.mrf.mxu0 }
 0x1ec   : > { %v344_v40 = vadd.f32 %v343_v39, %v261_v38 }
 0x1ed   : > { %v784_v41 = vpop.f32.mrf.mxu1 }
 0x1ee   : > { %v744_v42 = vmul.f32 -1.442695, %v344_v40  ;;  %v791_v43 = vpop.f32.mrf.mxu0  ;;  %v426_v8 = vadd.f32 %v784_v41, %v266_v63 }
 0x1ef   : > { %v420_v44 = vpop.f32.mrf.mxu1  ;;  %v503_v12 = vadd.f32 %v791_v43, %v266_v63 }
 0x1f0   : > { %855 = vpow2.f32 %v744_v42  ;;  %v421_v45 = vadd.f32 %v420_v44, %v261_v38  ;;  %v497_v46 = vpop.f32.mrf.mxu0 }
 0x1f1   : > { %v498_v47 = vadd.f32 %v497_v46, %v261_v38  ;;  %v798_v48 = vpop.f32.mrf.mxu1 }
 0x1f2   : > { %v745_v49 = vmul.f32 -1.442695, %v421_v45  ;;  %v580_v18 = vadd.f32 %v798_v48, %v266_v63 }
 0x1f3   : > { %v746_v50 = vmul.f32 -1.442695, %v498_v47  ;;  %v574_v51 = vpop.f32.mrf.mxu1 }
 0x1f4   : > { %857 = vpow2.f32 %v745_v49  ;;  %v575_v52 = vadd.f32 %v574_v51, %v261_v38 }
 0x1f5   : > { %859 = vpow2.f32 %v746_v50 }
 0x1f6   : > { %v747_v53 = vmul.f32 -1.442695, %v575_v52 }
 0x1f8   : > { %861 = vpow2.f32 %v747_v53 }
 0x1fd   : > { %v856_v54 = vpop.eup %855 }
 0x1fe   : > { %v595_v55 = vadd.f32 1.0, %v856_v54 }
 0x200   : > { %863 = vrcp.f32 %v595_v55 }
 0x201   : > { %v858_v56 = vpop.eup %857 }
 0x202   : > { %v860_v57 = vpop.eup %859  ;;  %v596_v58 = vadd.f32 1.0, %v858_v56 }
 0x203   : > { %v597_v59 = vadd.f32 1.0, %v860_v57 }
 0x204   : > { %865 = vrcp.f32 %v596_v58 }
 0x205   : > { %v862_v60 = vpop.eup %861  ;;  %867 = vrcp.f32 %v597_v59 }
 0x206   : > { %v598_v61 = vadd.f32 1.0, %v862_v60 }
 0x208   : > { %869 = vrcp.f32 %v598_v61 }
 0x20d   : > { %v864_v62 = vpop.eup %863 }
 0x20e   : > { %v611_v0 = vrot.slane %v864_v62, 4 }
 0x210   : > { %v619_v1 = vmul.f32 %v611_v0, %v344_v40 }
 0x211   : > { %v866_v3 = vpop.eup %865 }
 0x212   : > { %v868_v4 = vpop.eup %867  ;;  %v623_v5 = vadd.f32 %v619_v1, %v349_v2  ;;  %v612_v6 = vrot.slane %v866_v3, 4 }
 0x213   : > { %v613_v7 = vrot.slane %v868_v4, 4 }
 0x214   : > { %v627_v9 = vmax.f32 %v623_v5, 0.0  ;;  %v620_v10 = vmul.f32 %v612_v6, %v421_v45 }
 0x215   : > { %v870_v11 = vpop.eup %869  ;;  %v621_v13 = vmul.f32 %v613_v7, %v498_v47 }
 0x216   : > { %632 = vst.msk [vmem:[%s188_s28] sm:$0xf] %vm631_vm4, %v627_v9  ;;  %v624_v14 = vadd.f32 %v620_v10, %v426_v8  ;;  %v614_v15 = vrot.slane %v870_v11, 4 }
 0x217   : > { %v625_v16 = vadd.f32 %v621_v13, %v503_v12 }
 0x218   : > { %v628_v17 = vmax.f32 %v624_v14, 0.0  ;;  %v622_v19 = vmul.f32 %v614_v15, %v575_v52 }
 0x219   : > { %v629_v20 = vmax.f32 %v625_v16, 0.0 }
 0x21a   : > { %633 = vst.msk [vmem:[%s188_s28 + $0x4] sm:$0xf] %vm631_vm4, %v628_v17  ;;  %v626_v21 = vadd.f32 %v622_v19, %v580_v18 }
 0x21b   : > { %634 = vst.msk [vmem:[%s188_s28 + $0x8] sm:$0xf] %vm631_vm4, %v629_v20 }
 0x21c   : > { %v630_v22 = vmax.f32 %v626_v21, 0.0 }
 0x21e   : > { %635 = vst.msk [vmem:[%s188_s28 + $0xc] sm:$0xf] %vm631_vm4, %v630_v22 }
 0x21f   : > { %912 = shalt.err (!%p909_p10)
}
 0x220   : > { %s913_s8 = scalar_lea.hbm %s1157_s11, 256  ;;  %s917_s20 = scalar_lea.hbm %s1206_s3, 512 }
 0x221   : > { %p914_p0 = scmp.ne.s32.totalorder %s1157_s11, %s913_s8  ;;  %p918_p1 = scmp.lt.s32.totalorder %s1157_s11, %s1206_s3 }
 0x222   : > { %p919_p3 = scmp.lt.s32.totalorder %s917_s20, %s913_s8 }
 0x223   : > { %p915_p2 = pnand %p914_p0, %p1215_p12 }
 0x224   : > { %p920_p6 = por %p919_p3, %p918_p1 }
 0x225   : > { %p916_p9 = pneg %p915_p2 }
 0x227   : > { %p921_p11 = pnand %p920_p6, %p916_p9 }
 0x229   : > { %924 = shalt.err (!%p921_p11)
}
 0x22a   : > { %s973_s27 = smov 64   ;;  %s974_s28 = smov 4  }
 0x22b   : > { %801 = dma.vmem_to_hbm [thread:$0]  (%p1215_p12), %s1159_s30, 256, %s1157_s11, %s637_s16, %s973_s27, %s973_s27, %s974_s28  }
 0x22c PF: > { %s665_s29 = sand.u32 1, %s951_s12   ;;  %p1216_p13 = scmp.ne.s32.totalorder %s1212_s25, 0 }
 0x22d   : > { %p1217_p4 = scmp.ge.s32.totalorder %s963_s15, 2  ;;  %s666_s10 = scalar_lea.sflag [#allocation4], %s665_s29 }
 0x22f   : > { %p808_p5 = pnand %p1217_p4, %p1216_p13 }
 0x231   : > { %p809_p7 = pneg %p808_p5 }
 0x233   : > { %946 = dma.done.wait (%p809_p7), %s666_s10, 256  }
 0x234   : > { %948 = vsyncadd (%p809_p7), %s666_s10, 4294967040  ;;  %p16_p8 = scmp.ge.s32.totalorder %s1020_s18, 4   ;;  %s1218_s12 = smov %s955_s13 }
 0x235   : > { %s1219_s13 = smov %s959_s14  ;;  %s1220_s14 = smov %s1032_s21 }
 0x236   : > { %s1221_s15 = smov %s1020_s18  ;;  %18 = sbr.rel (!%p16_p8) target bundleno = 5 (0x5), region = 77 }
 0x23b   :  { %671 = vsyncpa [#allocation3], 1 }
 0x23c   :  { %673 = vsyncpa [#allocation3 + $0x1], 1 }
 0x23d   :  { %674 = vsyncpa [#allocation4], 1 }
 0x23e   :  { %676 = vsyncpa [#allocation4 + $0x1], 1 }

</bundles_post_ra>
